<compile_context>
chip_gen: v6e
topology: v6e:2x2x1
jax: 0.10.0
libtpu: 0.0.40
codegen_flags: <defaults>
</compile_context>

<pallas_src>
import jax
import jax.numpy as jnp
from jax.experimental import pallas as pl
from jax.experimental.pallas import tpu as pltpu

LANE = 128


def _round_up(x, m):
    return (x + m - 1) // m * m


def dqn_kernel(x_ref, w1_ref, b1_ref, w2_ref, b2_ref, w3_ref, b3_ref, o_ref):
    # x / weights are bf16 (MXU-native); accumulate in f32; bias+ReLU in f32.
    x = x_ref[...]
    h1 = jnp.dot(x, w1_ref[...], preferred_element_type=jnp.float32) + b1_ref[...]
    h1 = jnp.maximum(h1, 0.0)
    h2 = jnp.dot(h1.astype(w2_ref.dtype), w2_ref[...],
                 preferred_element_type=jnp.float32) + b2_ref[...]
    h2 = jnp.maximum(h2, 0.0)
    out = jnp.dot(h2.astype(w3_ref.dtype), w3_ref[...],
                  preferred_element_type=jnp.float32) + b3_ref[...]
    o_ref[...] = out.astype(o_ref.dtype)


def dqn_forward(x, w1, b1, w2, b2, w3, b3, *, tm=512, compute_dtype=jnp.bfloat16):
    """y = relu(x@W1+b1) -> relu(@W2+b2) -> @W3+b3, weights stored as (in, out)."""
    B, state_dim = x.shape
    hidden = w1.shape[1]
    action_dim = w3.shape[1]

    # Lane-dense output width (pad action_dim up to a multiple of 128).
    n_pad = _round_up(max(action_dim, LANE), LANE)

    # Batch tile: multiple of 8 sublanes, capped at `tm` rows (VMEM-safe on v7x too).
    tm = min(tm, _round_up(B, 8))
    b_pad = _round_up(B, tm)

    # Prepare operands: bf16 for everything feeding the MXU, f32 biases.
    x_p = jnp.zeros((b_pad, state_dim), compute_dtype).at[:B].set(x.astype(compute_dtype))
    w1c = w1.astype(compute_dtype)
    w2c = w2.astype(compute_dtype)
    w3p = jnp.zeros((hidden, n_pad), compute_dtype).at[:, :action_dim].set(
        w3.astype(compute_dtype))
    b1c = b1.astype(jnp.float32).reshape(1, hidden)
    b2c = b2.astype(jnp.float32).reshape(1, hidden)
    b3p = jnp.zeros((1, n_pad), jnp.float32).at[:, :action_dim].set(
        b3.astype(jnp.float32).reshape(1, action_dim))

    grid = (b_pad // tm,)
    const = lambda shape: pl.BlockSpec(shape, lambda i: (0, 0))  # grid-invariant block

    out = pl.pallas_call(
        dqn_kernel,
        out_shape=jax.ShapeDtypeStruct((b_pad, n_pad), jnp.float32),
        grid_spec=pltpu.PrefetchScalarGridSpec(
            num_scalar_prefetch=0,
            grid=grid,
            in_specs=[
                pl.BlockSpec((tm, state_dim), lambda i: (i, 0)),   # x: batch-tiled
                const((state_dim, hidden)), const((1, hidden)),    # W1, b1 (resident)
                const((hidden, hidden)),    const((1, hidden)),    # W2, b2 (resident)
                const((hidden, n_pad)),     const((1, n_pad)),     # W3, b3 (resident, padded)
            ],
            out_specs=pl.BlockSpec((tm, n_pad), lambda i: (i, 0)),
        ),
        compiler_params=pltpu.CompilerParams(
            dimension_semantics=("parallel",),         # megacore-shard batch tiles on v7x
            vmem_limit_bytes=32 * 1024 * 1024,
        ),
    )(x_p, w1c, b1c, w2c, b2c, w3p, b3p)

    return out[:B, :action_dim]


def init_params(key, state_dim, action_dim, hidden=128):
    """Deterministic init mimicking nn.Linear's uniform(-1/sqrt(fan_in), 1/sqrt(fan_in))."""
    ks = jax.random.split(key, 6)

    def lin(kw, kb, fan_in, fan_out):
        bound = 1.0 / jnp.sqrt(fan_in)
        # stored as (in, out) so kernel computes x @ W
        w = jax.random.uniform(kw, (fan_in, fan_out), jnp.float32, -bound, bound)
        b = jax.random.uniform(kb, (1, fan_out), jnp.float32, -bound, bound)
        return w, b

    w1, b1 = lin(ks[0], ks[1], state_dim, hidden)
    w2, b2 = lin(ks[2], ks[3], hidden, hidden)
    w3, b3 = lin(ks[4], ks[5], hidden, action_dim)
    return w1, b1, w2, b2, w3, b3


def dqn_reference(x, w1, b1, w2, b2, w3, b3):
    h1 = jnp.maximum(x @ w1 + b1, 0.0)
    h2 = jnp.maximum(h1 @ w2 + b2, 0.0)
    return h2 @ w3 + b3


if __name__ == "__main__":
    state_dim, action_dim, batch = 16, 8, 8
    key = jax.random.PRNGKey(0)
    kx, kp = jax.random.split(key)

    x = jax.random.normal(kx, (batch, state_dim), jnp.float32)
    params = init_params(kp, state_dim, action_dim)

    out = dqn_forward(x, *params)
    out = jax.block_until_ready(out)

    ref = dqn_reference(x, *params)
    assert out.shape == (batch, action_dim)
    # bf16 MXU inputs (f32 accumulation) -> loose tolerance vs the pure-f32 reference.
    assert jnp.allclose(out, ref, atol=5e-2, rtol=5e-2), \
        f"max abs err {jnp.max(jnp.abs(out - ref))}"

    print("KERNEL_OK")
</pallas_src>

<mosaic_0001>
module attributes {stable_mosaic.version = 11 : i64} {
  func.func @dqn_kernel(%arg0: i32, %arg1: memref<8x16xbf16, #tpu.memory_space<vmem>>, %arg2: memref<16x128xbf16, #tpu.memory_space<vmem>>, %arg3: memref<1x128xf32, #tpu.memory_space<vmem>>, %arg4: memref<128x128xbf16, #tpu.memory_space<vmem>>, %arg5: memref<1x128xf32, #tpu.memory_space<vmem>>, %arg6: memref<128x128xbf16, #tpu.memory_space<vmem>>, %arg7: memref<1x128xf32, #tpu.memory_space<vmem>>, %arg8: memref<8x128xf32, #tpu.memory_space<vmem>>) attributes {dimension_semantics = [#tpu.dimension_semantics<parallel>], iteration_bounds = array<i64: 1>, scalar_prefetch = 0 : i64, scratch_operands = 0 : i64, tpu.core_type = #tpu.core_type<tc>, window_params = [{transform_indices = @transform_0, window_bounds = array<i64: 8, 16>}, {pipeline_mode = #tpu.pipeline_mode<synchronous>, transform_indices = @transform_1, window_bounds = array<i64: 16, 128>}, {pipeline_mode = #tpu.pipeline_mode<synchronous>, transform_indices = @transform_2, window_bounds = array<i64: 1, 128>}, {pipeline_mode = #tpu.pipeline_mode<synchronous>, transform_indices = @transform_3, window_bounds = array<i64: 128, 128>}, {pipeline_mode = #tpu.pipeline_mode<synchronous>, transform_indices = @transform_4, window_bounds = array<i64: 1, 128>}, {pipeline_mode = #tpu.pipeline_mode<synchronous>, transform_indices = @transform_5, window_bounds = array<i64: 128, 128>}, {pipeline_mode = #tpu.pipeline_mode<synchronous>, transform_indices = @transform_6, window_bounds = array<i64: 1, 128>}, {transform_indices = @transform_7, window_bounds = array<i64: 8, 128>}]} {
    %c0 = arith.constant 0 : index
    %c0_0 = arith.constant 0 : index
    %0 = vector.load %arg1[%c0, %c0_0] : memref<8x16xbf16, #tpu.memory_space<vmem>>, vector<8x16xbf16>
    %c0_1 = arith.constant 0 : index
    %c0_2 = arith.constant 0 : index
    %1 = vector.load %arg2[%c0_1, %c0_2] : memref<16x128xbf16, #tpu.memory_space<vmem>>, vector<16x128xbf16>
    %cst = arith.constant dense<0.000000e+00> : vector<8x128xf32>
    %2 = tpu.matmul %0, %1, %cst {dimension_numbers = #tpu.dot_dimension_numbers<[1], [0], [0], [1], [0, 0, 1, 1], [], []>} : vector<8x16xbf16>, vector<16x128xbf16>, vector<8x128xf32> -> vector<8x128xf32>
    %c0_3 = arith.constant 0 : index
    %c0_4 = arith.constant 0 : index
    %3 = vector.load %arg3[%c0_3, %c0_4] : memref<1x128xf32, #tpu.memory_space<vmem>>, vector<1x128xf32>
    %4 = vector.broadcast %3 : vector<1x128xf32> to vector<8x128xf32>
    %5 = arith.addf %2, %4 : vector<8x128xf32>
    %cst_5 = arith.constant 0.000000e+00 : f32
    %6 = vector.broadcast %cst_5 : f32 to vector<8x128xf32>
    %7 = arith.maximumf %5, %6 : vector<8x128xf32>
    %8 = arith.truncf %7 : vector<8x128xf32> to vector<8x128xbf16>
    %c0_6 = arith.constant 0 : index
    %c0_7 = arith.constant 0 : index
    %9 = vector.load %arg4[%c0_6, %c0_7] : memref<128x128xbf16, #tpu.memory_space<vmem>>, vector<128x128xbf16>
    %cst_8 = arith.constant dense<0.000000e+00> : vector<8x128xf32>
    %10 = tpu.matmul %8, %9, %cst_8 {dimension_numbers = #tpu.dot_dimension_numbers<[1], [0], [0], [1], [0, 0, 1, 1], [], []>} : vector<8x128xbf16>, vector<128x128xbf16>, vector<8x128xf32> -> vector<8x128xf32>
    %c0_9 = arith.constant 0 : index
    %c0_10 = arith.constant 0 : index
    %11 = vector.load %arg5[%c0_9, %c0_10] : memref<1x128xf32, #tpu.memory_space<vmem>>, vector<1x128xf32>
    %12 = vector.broadcast %11 : vector<1x128xf32> to vector<8x128xf32>
    %13 = arith.addf %10, %12 : vector<8x128xf32>
    %cst_11 = arith.constant 0.000000e+00 : f32
    %14 = vector.broadcast %cst_11 : f32 to vector<8x128xf32>
    %15 = arith.maximumf %13, %14 : vector<8x128xf32>
    %16 = arith.truncf %15 : vector<8x128xf32> to vector<8x128xbf16>
    %c0_12 = arith.constant 0 : index
    %c0_13 = arith.constant 0 : index
    %17 = vector.load %arg6[%c0_12, %c0_13] : memref<128x128xbf16, #tpu.memory_space<vmem>>, vector<128x128xbf16>
    %cst_14 = arith.constant dense<0.000000e+00> : vector<8x128xf32>
    %18 = tpu.matmul %16, %17, %cst_14 {dimension_numbers = #tpu.dot_dimension_numbers<[1], [0], [0], [1], [0, 0, 1, 1], [], []>} : vector<8x128xbf16>, vector<128x128xbf16>, vector<8x128xf32> -> vector<8x128xf32>
    %c0_15 = arith.constant 0 : index
    %c0_16 = arith.constant 0 : index
    %19 = vector.load %arg7[%c0_15, %c0_16] : memref<1x128xf32, #tpu.memory_space<vmem>>, vector<1x128xf32>
    %20 = vector.broadcast %19 : vector<1x128xf32> to vector<8x128xf32>
    %21 = arith.addf %18, %20 : vector<8x128xf32>
    %c0_17 = arith.constant 0 : index
    %c0_18 = arith.constant 0 : index
    %22 = vector.load %arg8[%c0_17, %c0_18] : memref<8x128xf32, #tpu.memory_space<vmem>>, vector<8x128xf32>
    tpu.vector_store %arg8[%c0_17, %c0_18], %21 {strides = array<i32>} : memref<8x128xf32, #tpu.memory_space<vmem>>, vector<8x128xf32>,
    return
  }
  func.func @transform_0(%arg0: i32) -> (i32, i32) {
    %c0_i32 = arith.constant 0 : i32
    %c0_i32_0 = arith.constant 0 : i32
    return %arg0, %c0_i32 : i32, i32
  }
  func.func @transform_1(%arg0: i32) -> (i32, i32) {
    %c0_i32 = arith.constant 0 : i32
    %c0_i32_0 = arith.constant 0 : i32
    %c0_i32_1 = arith.constant 0 : i32
    return %c0_i32, %c0_i32_0 : i32, i32
  }
  func.func @transform_2(%arg0: i32) -> (i32, i32) {
    %c0_i32 = arith.constant 0 : i32
    %c0_i32_0 = arith.constant 0 : i32
    %c0_i32_1 = arith.constant 0 : i32
    return %c0_i32, %c0_i32_0 : i32, i32
  }
  func.func @transform_3(%arg0: i32) -> (i32, i32) {
    %c0_i32 = arith.constant 0 : i32
    %c0_i32_0 = arith.constant 0 : i32
    %c0_i32_1 = arith.constant 0 : i32
    return %c0_i32, %c0_i32_0 : i32, i32
  }
  func.func @transform_4(%arg0: i32) -> (i32, i32) {
    %c0_i32 = arith.constant 0 : i32
    %c0_i32_0 = arith.constant 0 : i32
    %c0_i32_1 = arith.constant 0 : i32
    return %c0_i32, %c0_i32_0 : i32, i32
  }
  func.func @transform_5(%arg0: i32) -> (i32, i32) {
    %c0_i32 = arith.constant 0 : i32
    %c0_i32_0 = arith.constant 0 : i32
    %c0_i32_1 = arith.constant 0 : i32
    return %c0_i32, %c0_i32_0 : i32, i32
  }
  func.func @transform_6(%arg0: i32) -> (i32, i32) {
    %c0_i32 = arith.constant 0 : i32
    %c0_i32_0 = arith.constant 0 : i32
    %c0_i32_1 = arith.constant 0 : i32
    return %c0_i32, %c0_i32_0 : i32, i32
  }
  func.func @transform_7(%arg0: i32) -> (i32, i32) {
    %c0_i32 = arith.constant 0 : i32
    %c0_i32_0 = arith.constant 0 : i32
    return %arg0, %c0_i32 : i32, i32
  }
}

</mosaic_0001>

<bundles_post_ra>
// kernel: tpu_custom_call.1
= control target key start
LH: loop header
LB: loop body
LE: loop exit
PB: predicated region body
PF: predicated region fallthrough
CT: control target
= control target key end

     0   :  { %12 = vsyncpa [#allocation3], 0  ;;  %s708_s0 = inlined_call_operand.hbm [shape: bf16[8,16], index: 0, kind: input, shape index: {}]   ;;  %s709_s1 = inlined_call_operand.hbm [shape: bf16[16,128], index: 1, kind: input, shape index: {}]   ;;  %s710_s2 = inlined_call_operand.vmem [shape: f32[1,128], index: 2, kind: input, shape index: {}]   ;;  %s711_s3 = inlined_call_operand.hbm [shape: bf16[128,128], index: 3, kind: input, shape index: {}]   ;;  %s712_s4 = inlined_call_operand.vmem [shape: f32[1,128], index: 4, kind: input, shape index: {}]   ;;  %s713_s5 = inlined_call_operand.hbm [shape: bf16[128,128], index: 5, kind: input, shape index: {}]   ;;  %s714_s6 = inlined_call_operand.vmem [shape: f32[1,128], index: 6, kind: input, shape index: {}]   ;;  %s715_s7 = inlined_call_operand.hbm [shape: f32[8,128], index: 7, kind: output, shape index: {}]  }
   0x1   :  { %13 = vsyncpa [#allocation6], 0 }
   0x2   :  { %14 = vsyncpa [#allocation9], 0 }
   0x3   :  { %15 = vsyncpa [#allocation4], 0  ;;  %s606_s24 = smov [#allocation5]  }
   0x4   :  { %s31_s25 = sshll.u32 %s606_s24, 4  ;;  %s32_s25 = int_to_ptr.vmem [resolvable:$true] %s31_s25 }
   0x5   :  { %s506_s26 = scalar_lea.vmem %s32_s25, 128  ;;  %p511_p1 = scmp.lt.s32.totalorder %s32_s25, %s32_s25 }
   0x6   :  { %p507_p0 = scmp.ne.s32.totalorder %s32_s25, %s506_s26  ;;  %p512_p2 = scmp.lt.s32.totalorder %s506_s26, %s506_s26 }
   0x8   :  { %p513_p3 = por %p512_p2, %p511_p1 }
   0xa   :  { %p514_p4 = pnand %p513_p3, %p507_p0 }
   0xc   :  { %517 = shalt.err (!%p514_p4)
}
   0xd   :  { %s607_s27 = smov 64   ;;  %s608_s28 = smov 4  }
   0xe   :  { %37 = dma.hbm_to_vmem [thread:$0]  %s709_s1, 128, %s32_s25, [#allocation6], %s607_s27, %s607_s27, %s608_s28  }
   0xf   :  { %s609_s8 = smov [#allocation2]   ;;  %s610_s10 = smov [#allocation7]  }
  0x10   :  { %s22_s9 = sshll.u32 %s609_s8, 4  ;;  %s45_s11 = sshll.u32 %s610_s10, 4  ;;  %s23_s9 = int_to_ptr.vmem [resolvable:$true] %s22_s9  ;;  %s46_s11 = int_to_ptr.vmem [resolvable:$true] %s45_s11 }
  0x11   :  { %s526_s12 = scalar_lea.vmem %s23_s9, 64  ;;  %p531_p6 = scmp.lt.s32.totalorder %s23_s9, %s23_s9 }
  0x12   :  { %p527_p5 = scmp.ne.s32.totalorder %s23_s9, %s526_s12  ;;  %p532_p7 = scmp.lt.s32.totalorder %s526_s12, %s526_s12 }
  0x14   :  { %p533_p8 = por %p532_p7, %p531_p6 }
  0x16   :  { %p534_p9 = pnand %p533_p8, %p527_p5 }
  0x18   :  { %537 = shalt.err (!%p534_p9)
}
  0x19   :  { %25 = dma.hbm_to_vmem [thread:$0]  %s708_s0, 64, %s23_s9, [#allocation3]  }
  0x1a   :  { %s546_s15 = scalar_lea.vmem %s46_s11, 1024  ;;  %p551_p11 = scmp.lt.s32.totalorder %s46_s11, %s46_s11 }
  0x1b   :  { %p547_p10 = scmp.ne.s32.totalorder %s46_s11, %s546_s15  ;;  %p552_p12 = scmp.lt.s32.totalorder %s546_s15, %s546_s15 }
  0x1d   :  { %p553_p13 = por %p552_p12, %p551_p11 }
  0x1f   :  { %p554_p0 = pnand %p553_p13, %p547_p10 }
  0x21   :  { %557 = shalt.err (!%p554_p0)
}
  0x22   :  { %51 = dma.hbm_to_vmem [thread:$0]  %s711_s3, 1024, %s46_s11, [#allocation6], %s607_s27, %s607_s27, %s608_s28  }
  0x23   :  { %s611_s17 = smov [#allocation8]  }
  0x24   :  { %s59_s18 = sshll.u32 %s611_s17, 4  ;;  %s60_s18 = int_to_ptr.vmem [resolvable:$true] %s59_s18 }
  0x25   :  { %s566_s19 = scalar_lea.vmem %s60_s18, 1024  ;;  %p571_p2 = scmp.lt.s32.totalorder %s60_s18, %s60_s18 }
  0x26   :  { %p567_p1 = scmp.ne.s32.totalorder %s60_s18, %s566_s19  ;;  %p572_p3 = scmp.lt.s32.totalorder %s566_s19, %s566_s19 }
  0x28   :  { %p573_p4 = por %p572_p3, %p571_p2 }
  0x2a   :  { %p574_p5 = pnand %p573_p4, %p567_p1 }
  0x2c   :  { %577 = shalt.err (!%p574_p5)
}
  0x2d   :  { %65 = dma.hbm_to_vmem [thread:$0]  %s713_s5, 1024, %s60_s18, [#allocation9], %s607_s27, %s607_s27, %s608_s28  }
  0x2e   :  { %598 = dma.done.wait [#allocation3], 64  }
  0x2f   :  { %599 = vsyncadd [#allocation3], 4294967232 }
  0x30   :  { %600 = dma.done.wait [#allocation6], 1152  }
  0x31   :  { %601 = vsyncadd [#allocation6], 4294966144 }
  0x32   :  { %602 = dma.done.wait [#allocation9], 1024  }
  0x33   :  { %603 = vsyncadd [#allocation9], 4294966272  ;;  %v612_v0 = vmov 0.0   ;;  %vm613_vm0 = vmmov 0   ;;  %v481_v1 = vld [vmem:[#allocation5] sm:$0xff]   ;;  %vm97_vm1 = vcmask 130048  }
  0x34   :  { %426 = vmatprep.subr.bf16.mxu0 %v612_v0  ;;  %428 = vmatprep.mubr.msk.bf16.mxu0 %vm613_vm0, %v612_v0  ;;  %v81_v2 = vld [vmem:[#allocation2] sm:$0xf]  ;;  %v482_v3 = vld [vmem:[#allocation7 + $0x38] sm:$0xff]   ;;  %v484_v5 = vld [vmem:[#allocation7 + $0x28] sm:$0xff]   ;;  %s614_s24 = smov [#allocation10]  }
  0x35   :  { %432 = vmatprep.subr.bf16.mxu1 %v612_v0  ;;  %448 = vmatprep.mubr.msk.bf16.mxu1 %vm613_vm0, %v612_v0  ;;  %v483_v4 = vld [vmem:[#allocation7 + $0x30] sm:$0xff]   ;;  %v485_v6 = vld [vmem:[#allocation7 + $0x20] sm:$0xff]   ;;  %v486_v7 = vld [vmem:[#allocation7 + $0x18] sm:$0xff]   ;;  %s374_s25 = sshll.u32 %s614_s24, 4  ;;  %s375_s25 = int_to_ptr.vmem [resolvable:$true] %s374_s25 }
  0x36   :  { %427 = vmatpush3.bf16.msra.mxu0 %v481_v1  ;;  %433 = vmatpush3.bf16.msra.mxu1 %v482_v3  ;;  %v487_v8 = vld [vmem:[#allocation7 + $0x10] sm:$0xff]   ;;  %v488_v9 = vld [vmem:[#allocation7 + $0x8] sm:$0xff]   ;;  %v489_v10 = vld [vmem:[#allocation7] sm:$0xff]   ;;  %p583_p7 = scmp.lt.s32.totalorder %s375_s25, %s375_s25 }
  0x37   :  { %452 = vmatprep.subr.bf16.mxu0 %v612_v0  ;;  %434 = vmatprep.subr.bf16.mxu1 %v612_v0  ;;  %v490_v11 = vld [vmem:[#allocation8 + $0x38] sm:$0xff]   ;;  %v491_v12 = vld [vmem:[#allocation8 + $0x30] sm:$0xff]   ;;  %v492_v13 = vld [vmem:[#allocation8 + $0x28] sm:$0xff]  }
  0x38   :  { %v493_v14 = vld [vmem:[#allocation8 + $0x20] sm:$0xff]   ;;  %v494_v15 = vld [vmem:[#allocation8 + $0x18] sm:$0xff]   ;;  %v495_v16 = vld [vmem:[#allocation8 + $0x10] sm:$0xff]  }
  0x39   :  { %429 = vmatmul.mubr.msk.bf16.vlgmr.msra.gmra.mxu0 %vm97_vm1, %v81_v2  ;;  %v385_v17 = vld [vmem:[%s710_s2] ss:$0 sm:$0xff]  ;;  %v496_v25 = vld [vmem:[#allocation8 + $0x8] sm:$0xff]   ;;  %v497_v26 = vld [vmem:[#allocation8] sm:$0xff]  }
  0x3a   :  { %468 = vmatprep.mubr.msk.bf16.mxu0 %vm613_vm0, %v612_v0  ;;  %435 = vmatpush3.bf16.msra.mxu1 %v483_v4  ;;  %v388_v27 = vld [vmem:[%s712_s4] ss:$0 sm:$0xff]  ;;  %s578_s4 = scalar_lea.vmem %s375_s25, 128 }
  0x3b   :  { %436 = vmatprep.subr.bf16.mxu1 %v612_v0  ;;  %453 = vmatpush3.bf16.msra.mxu0 %v490_v11  ;;  %v397_v35 = vld [vmem:[%s714_s6] ss:$0 sm:$0xff]  ;;  %p579_p6 = scmp.ne.s32.totalorder %s375_s25, %s578_s4  ;;  %p584_p8 = scmp.lt.s32.totalorder %s578_s4, %s578_s4 }
  0x3c   :  { %454 = vmatprep.subr.bf16.mxu0 %v612_v0 }
  0x3d   :  { %p585_p9 = por %p584_p8, %p583_p7 }
  0x3e   :  { %437 = vmatpush3.bf16.msra.mxu1 %v484_v5 }
  0x3f   :  { %438 = vmatprep.subr.bf16.mxu1 %v612_v0  ;;  %455 = vmatpush3.bf16.msra.mxu0 %v491_v12  ;;  %p586_p10 = pnand %p585_p9, %p579_p6 }
  0x40   :  { %456 = vmatprep.subr.bf16.mxu0 %v612_v0 }
  0x42   :  { %439 = vmatpush3.bf16.msra.mxu1 %v485_v6 }
  0x43   :  { %440 = vmatprep.subr.bf16.mxu1 %v612_v0  ;;  %457 = vmatpush3.bf16.msra.mxu0 %v492_v13 }
  0x44   :  { %458 = vmatprep.subr.bf16.mxu0 %v612_v0 }
  0x46   :  { %441 = vmatpush3.bf16.msra.mxu1 %v486_v7 }
  0x47   :  { %442 = vmatprep.subr.bf16.mxu1 %v612_v0  ;;  %459 = vmatpush3.bf16.msra.mxu0 %v493_v14 }
  0x48   :  { %460 = vmatprep.subr.bf16.mxu0 %v612_v0 }
  0x4a   :  { %443 = vmatpush3.bf16.msra.mxu1 %v487_v8 }
  0x4b   :  { %444 = vmatprep.subr.bf16.mxu1 %v612_v0  ;;  %461 = vmatpush3.bf16.msra.mxu0 %v494_v15 }
  0x4c   :  { %462 = vmatprep.subr.bf16.mxu0 %v612_v0 }
  0x4e   :  { %445 = vmatpush3.bf16.msra.mxu1 %v488_v9 }
  0x4f   :  { %446 = vmatprep.subr.bf16.mxu1 %v612_v0  ;;  %463 = vmatpush3.bf16.msra.mxu0 %v495_v16 }
  0x50   :  { %464 = vmatprep.subr.bf16.mxu0 %v612_v0 }
  0x52   :  { %447 = vmatpush3.bf16.msra.mxu1 %v489_v10 }
  0x53   :  { %465 = vmatpush3.bf16.msra.mxu0 %v496_v25 }
  0x54   :  { %466 = vmatprep.subr.bf16.mxu0 %v612_v0 }
  0x57   :  { %467 = vmatpush3.bf16.msra.mxu0 %v497_v26 }
  0xf9   :  { %v135_v18 = vpop.f32.mrf.mxu0 }
  0xfa   :  { %v136_v19 = vadd.f32 %v385_v17, %v135_v18 }
  0xfb   :  { %v430_v20 = vpop.f32.mrf.mxu0 }
  0xfc   :  { %v141_v21 = vmax.f32 %v136_v19, 0.0 }
  0xfd   :  { %v138_v22 = vpop.f32.mrf.mxu0 }
  0xfe   :  { %v142_v23 = vpack.c.bf16 %v141_v21, %v141_v21 }
  0xff   :  { %v431_v24 = vpop.f32.mrf.mxu0 }
 0x100   :  { %449 = vmatmul.mubr.bf16.vlgmr.msra.gmra.mxu1 %v142_v23 }
 0x1c0   :  { %v248_v28 = vpop.f32.mrf.mxu1 }
 0x1c1   :  { %v249_v29 = vadd.f32 %v388_v27, %v248_v28 }
 0x1c2   :  { %v450_v30 = vpop.f32.mrf.mxu1 }
 0x1c3   :  { %v254_v31 = vmax.f32 %v249_v29, 0.0 }
 0x1c4   :  { %v251_v32 = vpop.f32.mrf.mxu1 }
 0x1c5   :  { %v255_v33 = vpack.c.bf16 %v254_v31, %v254_v31 }
 0x1c6   :  { %v451_v34 = vpop.f32.mrf.mxu1 }
 0x1c7   :  { %469 = vmatmul.mubr.bf16.vlgmr.msra.gmra.mxu0 %v255_v33 }
 0x287   :  { %v361_v36 = vpop.f32.mrf.mxu0 }
 0x288   :  { %v362_v37 = vadd.f32 %v397_v35, %v361_v36 }
 0x289   :  { %v470_v38 = vpop.f32.mrf.mxu0 }
 0x28a   :  { %367 = vst [vmem:[#allocation10] sm:$0xff] %v362_v37 }
 0x28b   :  { %v364_v39 = vpop.f32.mrf.mxu0 }
 0x28c   :  { %589 = shalt.err (!%p586_p10)
}
 0x28d   :  { %377 = dma.vmem_to_hbm [thread:$0]  %s375_s25, 128, %s715_s7, [#allocation4]   ;;  %v471_v40 = vpop.f32.mrf.mxu0 }
 0x28e   :  { %604 = dma.done.wait [#allocation4], 128  }
 0x28f   :  { %605 = vsyncadd [#allocation4], 4294967168 }
 0x290   :  { %381 = vsyncpa [#allocation3], 1 }
 0x291   :  { %382 = vsyncpa [#allocation6], 1 }
 0x292   :  { %383 = vsyncpa [#allocation9], 1 }
 0x293   :  { %384 = vsyncpa [#allocation4], 1 }

</bundles_post_ra>
